<compile_context>
chip_gen: v5e
topology: v5e:2x2
jax: 0.10.0
libtpu: 0.0.40
codegen_flags: <defaults>
</compile_context>

<pallas_src>
import math

import jax
import jax.numpy as jnp
from jax.experimental import pallas as pl
from jax.experimental.pallas import tpu as pltpu

N_INPUTS = 3
N_HIDDEN = 4
N_OUTPUT_CLASSES = 2
P_KEEP = 0.7  # Dropout(1 - P_KEEP) == Dropout(0.3); identity in eval/inference.

_SUB = 8           # sublanes per vreg
_LANE = 128        # lanes per vreg
_TILE = _SUB * _LANE   # batch granularity: 1024 rows -> one full vreg footprint


def _round_up(n, m):
    return ((n + m - 1) // m) * m


def _mlp_softmax_kernel(x_ref, w1_ref, b1_ref, w2_ref, b2_ref, w3_ref, b3_ref,
                        o_ref):
    # x_ref: (N_INPUTS, 8, TB/8) VMEM block -- x_ref[k] is a dense (8, TB/8)
    # slab with the batch packed across sublanes and lanes.
    # w*/b*_ref: tiny weight/bias tables resident in SMEM, read as scalars.
    xr = [x_ref[k] for k in range(N_INPUTS)]

    def dense(inputs, w_ref, b_ref, n_out, relu):
        # out_j = (relu)( sum_k inputs[k] * w[k, j] + b[j] )  -- unrolled
        # scalar x vector FMAs on the VPU (feature dims are 3/4/8/2).
        outs = []
        for j in range(n_out):
            acc = inputs[0] * w_ref[0, j]
            for k in range(1, len(inputs)):
                acc = acc + inputs[k] * w_ref[k, j]
            acc = acc + b_ref[0, j]
            if relu:
                acc = jnp.maximum(acc, 0.0)
            outs.append(acc)
        return outs

    h1 = dense(xr, w1_ref, b1_ref, N_HIDDEN, relu=True)                 # 3 -> 4
    h2 = dense(h1, w2_ref, b2_ref, 2 * N_HIDDEN, relu=True)             # 4 -> 8
    l0, l1 = dense(h2, w3_ref, b3_ref, N_OUTPUT_CLASSES, relu=False)    # 8 -> 2

    # Dropout(0.3): identity at inference time (eval-mode semantics).
    # TODO(synk): training-mode dropout (stochastic masking / scaling) not emitted.

    # 2-class softmax as a single EUP op:
    #   softmax([l0, l1])[0] == sigmoid(l0 - l1) == 0.5*tanh(0.5*(l0-l1)) + 0.5
    # Numerically safe (tanh saturates), rows sum to 1 exactly.
    p0 = 0.5 * jnp.tanh(0.5 * (l0 - l1)) + 0.5
    p1 = 1.0 - p0
    o_ref[0] = p0.astype(o_ref.dtype)
    o_ref[1] = p1.astype(o_ref.dtype)


def mlp_softmax_features_major(xt, params, *, block_rows=64 * 1024):
    """Fast path, no XLA transposes around the kernel.

    xt: (N_INPUTS, B) float32, features-major.
    Returns (N_OUTPUT_CLASSES, B) softmax probabilities (class-major).
    """
    w1, b1, w2, b2, w3, b3 = params
    assert xt.shape[0] == N_INPUTS
    B = xt.shape[1]
    xt = xt.astype(jnp.float32)

    # Batch tile: as large as asked for (amortizes per-step overhead), clamped
    # to the padded batch; keep >= 2 parallel grid steps when the batch allows
    # it so both v7x TensorCores get work.
    bp_min = _round_up(B, _TILE)
    tb = min(_round_up(block_rows, _TILE), bp_min)
    if bp_min >= 2 * _TILE:
        tb = min(tb, _round_up((bp_min + 1) // 2, _TILE))
    bp = _round_up(B, tb)

    if bp != B:
        xt = jnp.pad(xt, ((0, 0), (0, bp - B)))     # zero-pad ragged tail

    # Free row-major reshape: pack the batch across (sublane, lane) so every
    # vector op in the kernel uses full (8,128) vregs.
    cols = bp // _SUB
    tcols = tb // _SUB
    xp = xt.reshape(N_INPUTS, _SUB, cols)

    smem = pltpu.MemorySpace.SMEM
    out_p = pl.pallas_call(
        _mlp_softmax_kernel,
        out_shape=jax.ShapeDtypeStruct((N_OUTPUT_CLASSES, _SUB, cols),
                                       jnp.float32),
        grid=(bp // tb,),
        in_specs=[
            pl.BlockSpec((N_INPUTS, _SUB, tcols), lambda i: (0, 0, i)),  # x
            pl.BlockSpec(memory_space=smem),                             # w1 (3,4)
            pl.BlockSpec(memory_space=smem),                             # b1 (1,4)
            pl.BlockSpec(memory_space=smem),                             # w2 (4,8)
            pl.BlockSpec(memory_space=smem),                             # b2 (1,8)
            pl.BlockSpec(memory_space=smem),                             # w3 (8,2)
            pl.BlockSpec(memory_space=smem),                             # b3 (1,2)
        ],
        out_specs=pl.BlockSpec((N_OUTPUT_CLASSES, _SUB, tcols),
                               lambda i: (0, 0, i)),
        compiler_params=pltpu.CompilerParams(
            dimension_semantics=("parallel",),
            # Double-buffered in+out is only ~40*TB bytes (<= ~2.5 MiB at the
            # default tile); 48 MiB is safe on v5e/v6e and within v7x's 64 MiB.
            vmem_limit_bytes=48 * 1024 * 1024,
        ),
    )(xp, w1, b1, w2, b2, w3, b3)

    return out_p.reshape(N_OUTPUT_CLASSES, bp)[:, :B]


def my_custom_module_forward(x, params, *, block_rows=64 * 1024):
    """Module-compatible wrapper: (B, N_INPUTS) -> (B, N_OUTPUT_CLASSES).

    Layout plumbing only (one transpose in, one transpose out).  Producers /
    consumers that can work in features-major layout should call
    mlp_softmax_features_major directly and skip both transposes.
    """
    xt = x.astype(jnp.float32).T
    out_t = mlp_softmax_features_major(xt, params, block_rows=block_rows)
    return out_t.T


def init_params(key):
    """PyTorch-style Linear init: U(-1/sqrt(fan_in), 1/sqrt(fan_in)).

    Weights stored as (in_features, out_features); biases as (1, out).
    """
    keys = jax.random.split(key, 6)

    def linear(kw, kb, fan_in, fan_out):
        bound = 1.0 / math.sqrt(fan_in)
        w = jax.random.uniform(kw, (fan_in, fan_out), jnp.float32, -bound, bound)
        b = jax.random.uniform(kb, (1, fan_out), jnp.float32, -bound, bound)
        return w, b

    w1, b1 = linear(keys[0], keys[1], N_INPUTS, N_HIDDEN)
    w2, b2 = linear(keys[2], keys[3], N_HIDDEN, 2 * N_HIDDEN)
    w3, b3 = linear(keys[4], keys[5], 2 * N_HIDDEN, N_OUTPUT_CLASSES)
    return (w1, b1, w2, b2, w3, b3)


def _reference_forward(x, params):
    """Pure-JAX reference (eval-mode: dropout is identity).

    HIGHEST precision so the reference matmuls don't go through bf16 MXU
    passes and blur the comparison.
    """
    w1, b1, w2, b2, w3, b3 = params
    hi = jax.lax.Precision.HIGHEST
    h1 = jnp.maximum(jnp.dot(x, w1, precision=hi) + b1, 0.0)
    h2 = jnp.maximum(jnp.dot(h1, w2, precision=hi) + b2, 0.0)
    logits = jnp.dot(h2, w3, precision=hi) + b3
    return jax.nn.softmax(logits, axis=1)


if __name__ == "__main__":
    key = jax.random.PRNGKey(0)
    k_param, k_x = jax.random.split(key)

    params = init_params(k_param)

    # Small config (like the original spec's data: x in [0, 2*pi)).
    batch = 8
    x = jax.random.uniform(k_x, (batch, N_INPUTS), jnp.float32) * 2.0 * math.pi

    out = jax.block_until_ready(my_custom_module_forward(x, params))
    ref = _reference_forward(x, params)

    row_sums = jnp.sum(out, axis=1)
    assert out.shape == (batch, N_OUTPUT_CLASSES)
    assert bool(jnp.all(jnp.abs(row_sums - 1.0) < 1e-5))
    assert bool(jnp.allclose(out, ref, rtol=1e-4, atol=1e-4))

    # Second config: batch that is not a multiple of the tile and a grid with
    # multiple steps (exercises the padded tail + multi-step pipeline).
    k_x2 = jax.random.PRNGKey(1)
    batch2 = 2100
    x2 = jax.random.uniform(k_x2, (batch2, N_INPUTS), jnp.float32) * 2.0 * math.pi
    out2 = jax.block_until_ready(
        my_custom_module_forward(x2, params, block_rows=1024))
    ref2 = _reference_forward(x2, params)
    assert out2.shape == (batch2, N_OUTPUT_CLASSES)
    assert bool(jnp.all(jnp.abs(jnp.sum(out2, axis=1) - 1.0) < 1e-5))
    assert bool(jnp.allclose(out2, ref2, rtol=1e-4, atol=1e-4))

    print("KERNEL_OK")
</pallas_src>

<mosaic_0001>
module attributes {stable_mosaic.version = 11 : i64} {
  func.func @_mlp_softmax_kernel(%arg0: i32, %arg1: memref<3x8x128xf32, #tpu.memory_space<vmem>>, %arg2: memref<3x4xf32, #tpu.memory_space<smem>>, %arg3: memref<1x4xf32, #tpu.memory_space<smem>>, %arg4: memref<4x8xf32, #tpu.memory_space<smem>>, %arg5: memref<1x8xf32, #tpu.memory_space<smem>>, %arg6: memref<8x2xf32, #tpu.memory_space<smem>>, %arg7: memref<1x2xf32, #tpu.memory_space<smem>>, %arg8: memref<2x8x128xf32, #tpu.memory_space<vmem>>) attributes {dimension_semantics = [#tpu.dimension_semantics<parallel>], iteration_bounds = array<i64: 1>, scalar_prefetch = 0 : i64, scratch_operands = 0 : i64, tpu.core_type = #tpu.core_type<tc>, window_params = [{transform_indices = @transform_0, window_bounds = array<i64: 3, 8, 128>}, {transform_indices = @transform_1, window_bounds = array<i64: 3, 4>}, {transform_indices = @transform_2, window_bounds = array<i64: 1, 4>}, {transform_indices = @transform_3, window_bounds = array<i64: 4, 8>}, {transform_indices = @transform_4, window_bounds = array<i64: 1, 8>}, {transform_indices = @transform_5, window_bounds = array<i64: 8, 2>}, {transform_indices = @transform_6, window_bounds = array<i64: 1, 2>}, {transform_indices = @transform_7, window_bounds = array<i64: 2, 8, 128>}]} {
    %c0 = arith.constant 0 : index
    %c0_0 = arith.constant 0 : index
    %c0_1 = arith.constant 0 : index
    %0 = vector.load %arg1[%c0, %c0_0, %c0_1] : memref<3x8x128xf32, #tpu.memory_space<vmem>>, vector<1x8x128xf32>
    %1 = vector.shape_cast %0 : vector<1x8x128xf32> to vector<8x128xf32>
    %c1 = arith.constant 1 : index
    %c0_2 = arith.constant 0 : index
    %c0_3 = arith.constant 0 : index
    %2 = vector.load %arg1[%c1, %c0_2, %c0_3] : memref<3x8x128xf32, #tpu.memory_space<vmem>>, vector<1x8x128xf32>
    %3 = vector.shape_cast %2 : vector<1x8x128xf32> to vector<8x128xf32>
    %c2 = arith.constant 2 : index
    %c0_4 = arith.constant 0 : index
    %c0_5 = arith.constant 0 : index
    %4 = vector.load %arg1[%c2, %c0_4, %c0_5] : memref<3x8x128xf32, #tpu.memory_space<vmem>>, vector<1x8x128xf32>
    %5 = vector.shape_cast %4 : vector<1x8x128xf32> to vector<8x128xf32>
    %c0_6 = arith.constant 0 : index
    %c0_7 = arith.constant 0 : index
    %6 = memref.load %arg2[%c0_6, %c0_7] : memref<3x4xf32, #tpu.memory_space<smem>>
    %7 = vector.broadcast %6 : f32 to vector<8x128xf32>
    %8 = arith.mulf %1, %7 : vector<8x128xf32>
    %c1_8 = arith.constant 1 : index
    %c0_9 = arith.constant 0 : index
    %9 = memref.load %arg2[%c1_8, %c0_9] : memref<3x4xf32, #tpu.memory_space<smem>>
    %10 = vector.broadcast %9 : f32 to vector<8x128xf32>
    %11 = arith.mulf %3, %10 : vector<8x128xf32>
    %12 = arith.addf %8, %11 : vector<8x128xf32>
    %c2_10 = arith.constant 2 : index
    %c0_11 = arith.constant 0 : index
    %13 = memref.load %arg2[%c2_10, %c0_11] : memref<3x4xf32, #tpu.memory_space<smem>>
    %14 = vector.broadcast %13 : f32 to vector<8x128xf32>
    %15 = arith.mulf %5, %14 : vector<8x128xf32>
    %16 = arith.addf %12, %15 : vector<8x128xf32>
    %c0_12 = arith.constant 0 : index
    %c0_13 = arith.constant 0 : index
    %17 = memref.load %arg3[%c0_12, %c0_13] : memref<1x4xf32, #tpu.memory_space<smem>>
    %18 = vector.broadcast %17 : f32 to vector<8x128xf32>
    %19 = arith.addf %16, %18 : vector<8x128xf32>
    %cst = arith.constant 0.000000e+00 : f32
    %20 = vector.broadcast %cst : f32 to vector<8x128xf32>
    %21 = arith.maximumf %19, %20 : vector<8x128xf32>
    %c0_14 = arith.constant 0 : index
    %c1_15 = arith.constant 1 : index
    %22 = memref.load %arg2[%c0_14, %c1_15] : memref<3x4xf32, #tpu.memory_space<smem>>
    %23 = vector.broadcast %22 : f32 to vector<8x128xf32>
    %24 = arith.mulf %1, %23 : vector<8x128xf32>
    %c1_16 = arith.constant 1 : index
    %c1_17 = arith.constant 1 : index
    %25 = memref.load %arg2[%c1_16, %c1_17] : memref<3x4xf32, #tpu.memory_space<smem>>
    %26 = vector.broadcast %25 : f32 to vector<8x128xf32>
    %27 = arith.mulf %3, %26 : vector<8x128xf32>
    %28 = arith.addf %24, %27 : vector<8x128xf32>
    %c2_18 = arith.constant 2 : index
    %c1_19 = arith.constant 1 : index
    %29 = memref.load %arg2[%c2_18, %c1_19] : memref<3x4xf32, #tpu.memory_space<smem>>
    %30 = vector.broadcast %29 : f32 to vector<8x128xf32>
    %31 = arith.mulf %5, %30 : vector<8x128xf32>
    %32 = arith.addf %28, %31 : vector<8x128xf32>
    %c0_20 = arith.constant 0 : index
    %c1_21 = arith.constant 1 : index
    %33 = memref.load %arg3[%c0_20, %c1_21] : memref<1x4xf32, #tpu.memory_space<smem>>
    %34 = vector.broadcast %33 : f32 to vector<8x128xf32>
    %35 = arith.addf %32, %34 : vector<8x128xf32>
    %cst_22 = arith.constant 0.000000e+00 : f32
    %36 = vector.broadcast %cst_22 : f32 to vector<8x128xf32>
    %37 = arith.maximumf %35, %36 : vector<8x128xf32>
    %c0_23 = arith.constant 0 : index
    %c2_24 = arith.constant 2 : index
    %38 = memref.load %arg2[%c0_23, %c2_24] : memref<3x4xf32, #tpu.memory_space<smem>>
    %39 = vector.broadcast %38 : f32 to vector<8x128xf32>
    %40 = arith.mulf %1, %39 : vector<8x128xf32>
    %c1_25 = arith.constant 1 : index
    %c2_26 = arith.constant 2 : index
    %41 = memref.load %arg2[%c1_25, %c2_26] : memref<3x4xf32, #tpu.memory_space<smem>>
    %42 = vector.broadcast %41 : f32 to vector<8x128xf32>
    %43 = arith.mulf %3, %42 : vector<8x128xf32>
    %44 = arith.addf %40, %43 : vector<8x128xf32>
    %c2_27 = arith.constant 2 : index
    %c2_28 = arith.constant 2 : index
    %45 = memref.load %arg2[%c2_27, %c2_28] : memref<3x4xf32, #tpu.memory_space<smem>>
    %46 = vector.broadcast %45 : f32 to vector<8x128xf32>
    %47 = arith.mulf %5, %46 : vector<8x128xf32>
    %48 = arith.addf %44, %47 : vector<8x128xf32>
    %c0_29 = arith.constant 0 : index
    %c2_30 = arith.constant 2 : index
    %49 = memref.load %arg3[%c0_29, %c2_30] : memref<1x4xf32, #tpu.memory_space<smem>>
    %50 = vector.broadcast %49 : f32 to vector<8x128xf32>
    %51 = arith.addf %48, %50 : vector<8x128xf32>
    %cst_31 = arith.constant 0.000000e+00 : f32
    %52 = vector.broadcast %cst_31 : f32 to vector<8x128xf32>
    %53 = arith.maximumf %51, %52 : vector<8x128xf32>
    %c0_32 = arith.constant 0 : index
    %c3 = arith.constant 3 : index
    %54 = memref.load %arg2[%c0_32, %c3] : memref<3x4xf32, #tpu.memory_space<smem>>
    %55 = vector.broadcast %54 : f32 to vector<8x128xf32>
    %56 = arith.mulf %1, %55 : vector<8x128xf32>
    %c1_33 = arith.constant 1 : index
    %c3_34 = arith.constant 3 : index
    %57 = memref.load %arg2[%c1_33, %c3_34] : memref<3x4xf32, #tpu.memory_space<smem>>
    %58 = vector.broadcast %57 : f32 to vector<8x128xf32>
    %59 = arith.mulf %3, %58 : vector<8x128xf32>
    %60 = arith.addf %56, %59 : vector<8x128xf32>
    %c2_35 = arith.constant 2 : index
    %c3_36 = arith.constant 3 : index
    %61 = memref.load %arg2[%c2_35, %c3_36] : memref<3x4xf32, #tpu.memory_space<smem>>
    %62 = vector.broadcast %61 : f32 to vector<8x128xf32>
    %63 = arith.mulf %5, %62 : vector<8x128xf32>
    %64 = arith.addf %60, %63 : vector<8x128xf32>
    %c0_37 = arith.constant 0 : index
    %c3_38 = arith.constant 3 : index
    %65 = memref.load %arg3[%c0_37, %c3_38] : memref<1x4xf32, #tpu.memory_space<smem>>
    %66 = vector.broadcast %65 : f32 to vector<8x128xf32>
    %67 = arith.addf %64, %66 : vector<8x128xf32>
    %cst_39 = arith.constant 0.000000e+00 : f32
    %68 = vector.broadcast %cst_39 : f32 to vector<8x128xf32>
    %69 = arith.maximumf %67, %68 : vector<8x128xf32>
    %c0_40 = arith.constant 0 : index
    %c0_41 = arith.constant 0 : index
    %70 = memref.load %arg4[%c0_40, %c0_41] : memref<4x8xf32, #tpu.memory_space<smem>>
    %71 = vector.broadcast %70 : f32 to vector<8x128xf32>
    %72 = arith.mulf %21, %71 : vector<8x128xf32>
    %c1_42 = arith.constant 1 : index
    %c0_43 = arith.constant 0 : index
    %73 = memref.load %arg4[%c1_42, %c0_43] : memref<4x8xf32, #tpu.memory_space<smem>>
    %74 = vector.broadcast %73 : f32 to vector<8x128xf32>
    %75 = arith.mulf %37, %74 : vector<8x128xf32>
    %76 = arith.addf %72, %75 : vector<8x128xf32>
    %c2_44 = arith.constant 2 : index
    %c0_45 = arith.constant 0 : index
    %77 = memref.load %arg4[%c2_44, %c0_45] : memref<4x8xf32, #tpu.memory_space<smem>>
    %78 = vector.broadcast %77 : f32 to vector<8x128xf32>
    %79 = arith.mulf %53, %78 : vector<8x128xf32>
    %80 = arith.addf %76, %79 : vector<8x128xf32>
    %c3_46 = arith.constant 3 : index
    %c0_47 = arith.constant 0 : index
    %81 = memref.load %arg4[%c3_46, %c0_47] : memref<4x8xf32, #tpu.memory_space<smem>>
    %82 = vector.broadcast %81 : f32 to vector<8x128xf32>
    %83 = arith.mulf %69, %82 : vector<8x128xf32>
    %84 = arith.addf %80, %83 : vector<8x128xf32>
    %c0_48 = arith.constant 0 : index
    %c0_49 = arith.constant 0 : index
    %85 = memref.load %arg5[%c0_48, %c0_49] : memref<1x8xf32, #tpu.memory_space<smem>>
    %86 = vector.broadcast %85 : f32 to vector<8x128xf32>
    %87 = arith.addf %84, %86 : vector<8x128xf32>
    %cst_50 = arith.constant 0.000000e+00 : f32
    %88 = vector.broadcast %cst_50 : f32 to vector<8x128xf32>
    %89 = arith.maximumf %87, %88 : vector<8x128xf32>
    %c0_51 = arith.constant 0 : index
    %c1_52 = arith.constant 1 : index
    %90 = memref.load %arg4[%c0_51, %c1_52] : memref<4x8xf32, #tpu.memory_space<smem>>
    %91 = vector.broadcast %90 : f32 to vector<8x128xf32>
    %92 = arith.mulf %21, %91 : vector<8x128xf32>
    %c1_53 = arith.constant 1 : index
    %c1_54 = arith.constant 1 : index
    %93 = memref.load %arg4[%c1_53, %c1_54] : memref<4x8xf32, #tpu.memory_space<smem>>
    %94 = vector.broadcast %93 : f32 to vector<8x128xf32>
    %95 = arith.mulf %37, %94 : vector<8x128xf32>
    %96 = arith.addf %92, %95 : vector<8x128xf32>
    %c2_55 = arith.constant 2 : index
    %c1_56 = arith.constant 1 : index
    %97 = memref.load %arg4[%c2_55, %c1_56] : memref<4x8xf32, #tpu.memory_space<smem>>
    %98 = vector.broadcast %97 : f32 to vector<8x128xf32>
    %99 = arith.mulf %53, %98 : vector<8x128xf32>
    %100 = arith.addf %96, %99 : vector<8x128xf32>
    %c3_57 = arith.constant 3 : index
    %c1_58 = arith.constant 1 : index
    %101 = memref.load %arg4[%c3_57, %c1_58] : memref<4x8xf32, #tpu.memory_space<smem>>
    %102 = vector.broadcast %101 : f32 to vector<8x128xf32>
    %103 = arith.mulf %69, %102 : vector<8x128xf32>
    %104 = arith.addf %100, %103 : vector<8x128xf32>
    %c0_59 = arith.constant 0 : index
    %c1_60 = arith.constant 1 : index
    %105 = memref.load %arg5[%c0_59, %c1_60] : memref<1x8xf32, #tpu.memory_space<smem>>
    %106 = vector.broadcast %105 : f32 to vector<8x128xf32>
    %107 = arith.addf %104, %106 : vector<8x128xf32>
    %cst_61 = arith.constant 0.000000e+00 : f32
    %108 = vector.broadcast %cst_61 : f32 to vector<8x128xf32>
    %109 = arith.maximumf %107, %108 : vector<8x128xf32>
    %c0_62 = arith.constant 0 : index
    %c2_63 = arith.constant 2 : index
    %110 = memref.load %arg4[%c0_62, %c2_63] : memref<4x8xf32, #tpu.memory_space<smem>>
    %111 = vector.broadcast %110 : f32 to vector<8x128xf32>
    %112 = arith.mulf %21, %111 : vector<8x128xf32>
    %c1_64 = arith.constant 1 : index
    %c2_65 = arith.constant 2 : index
    %113 = memref.load %arg4[%c1_64, %c2_65] : memref<4x8xf32, #tpu.memory_space<smem>>
    %114 = vector.broadcast %113 : f32 to vector<8x128xf32>
    %115 = arith.mulf %37, %114 : vector<8x128xf32>
    %116 = arith.addf %112, %115 : vector<8x128xf32>
    %c2_66 = arith.constant 2 : index
    %c2_67 = arith.constant 2 : index
    %117 = memref.load %arg4[%c2_66, %c2_67] : memref<4x8xf32, #tpu.memory_space<smem>>
    %118 = vector.broadcast %117 : f32 to vector<8x128xf32>
    %119 = arith.mulf %53, %118 : vector<8x128xf32>
    %120 = arith.addf %116, %119 : vector<8x128xf32>
    %c3_68 = arith.constant 3 : index
    %c2_69 = arith.constant 2 : index
    %121 = memref.load %arg4[%c3_68, %c2_69] : memref<4x8xf32, #tpu.memory_space<smem>>
    %122 = vector.broadcast %121 : f32 to vector<8x128xf32>
    %123 = arith.mulf %69, %122 : vector<8x128xf32>
    %124 = arith.addf %120, %123 : vector<8x128xf32>
    %c0_70 = arith.constant 0 : index
    %c2_71 = arith.constant 2 : index
    %125 = memref.load %arg5[%c0_70, %c2_71] : memref<1x8xf32, #tpu.memory_space<smem>>
    %126 = vector.broadcast %125 : f32 to vector<8x128xf32>
    %127 = arith.addf %124, %126 : vector<8x128xf32>
    %cst_72 = arith.constant 0.000000e+00 : f32
    %128 = vector.broadcast %cst_72 : f32 to vector<8x128xf32>
    %129 = arith.maximumf %127, %128 : vector<8x128xf32>
    %c0_73 = arith.constant 0 : index
    %c3_74 = arith.constant 3 : index
    %130 = memref.load %arg4[%c0_73, %c3_74] : memref<4x8xf32, #tpu.memory_space<smem>>
    %131 = vector.broadcast %130 : f32 to vector<8x128xf32>
    %132 = arith.mulf %21, %131 : vector<8x128xf32>
    %c1_75 = arith.constant 1 : index
    %c3_76 = arith.constant 3 : index
    %133 = memref.load %arg4[%c1_75, %c3_76] : memref<4x8xf32, #tpu.memory_space<smem>>
    %134 = vector.broadcast %133 : f32 to vector<8x128xf32>
    %135 = arith.mulf %37, %134 : vector<8x128xf32>
    %136 = arith.addf %132, %135 : vector<8x128xf32>
    %c2_77 = arith.constant 2 : index
    %c3_78 = arith.constant 3 : index
    %137 = memref.load %arg4[%c2_77, %c3_78] : memref<4x8xf32, #tpu.memory_space<smem>>
    %138 = vector.broadcast %137 : f32 to vector<8x128xf32>
    %139 = arith.mulf %53, %138 : vector<8x128xf32>
    %140 = arith.addf %136, %139 : vector<8x128xf32>
    %c3_79 = arith.constant 3 : index
    %c3_80 = arith.constant 3 : index
    %141 = memref.load %arg4[%c3_79, %c3_80] : memref<4x8xf32, #tpu.memory_space<smem>>
    %142 = vector.broadcast %141 : f32 to vector<8x128xf32>
    %143 = arith.mulf %69, %142 : vector<8x128xf32>
    %144 = arith.addf %140, %143 : vector<8x128xf32>
    %c0_81 = arith.constant 0 : index
    %c3_82 = arith.constant 3 : index
    %145 = memref.load %arg5[%c0_81, %c3_82] : memref<1x8xf32, #tpu.memory_space<smem>>
    %146 = vector.broadcast %145 : f32 to vector<8x128xf32>
    %147 = arith.addf %144, %146 : vector<8x128xf32>
    %cst_83 = arith.constant 0.000000e+00 : f32
    %148 = vector.broadcast %cst_83 : f32 to vector<8x128xf32>
    %149 = arith.maximumf %147, %148 : vector<8x128xf32>
    %c0_84 = arith.constant 0 : index
    %c4 = arith.constant 4 : index
    %150 = memref.load %arg4[%c0_84, %c4] : memref<4x8xf32, #tpu.memory_space<smem>>
    %151 = vector.broadcast %150 : f32 to vector<8x128xf32>
    %152 = arith.mulf %21, %151 : vector<8x128xf32>
    %c1_85 = arith.constant 1 : index
    %c4_86 = arith.constant 4 : index
    %153 = memref.load %arg4[%c1_85, %c4_86] : memref<4x8xf32, #tpu.memory_space<smem>>
    %154 = vector.broadcast %153 : f32 to vector<8x128xf32>
    %155 = arith.mulf %37, %154 : vector<8x128xf32>
    %156 = arith.addf %152, %155 : vector<8x128xf32>
    %c2_87 = arith.constant 2 : index
    %c4_88 = arith.constant 4 : index
    %157 = memref.load %arg4[%c2_87, %c4_88] : memref<4x8xf32, #tpu.memory_space<smem>>
    %158 = vector.broadcast %157 : f32 to vector<8x128xf32>
    %159 = arith.mulf %53, %158 : vector<8x128xf32>
    %160 = arith.addf %156, %159 : vector<8x128xf32>
    %c3_89 = arith.constant 3 : index
    %c4_90 = arith.constant 4 : index
    %161 = memref.load %arg4[%c3_89, %c4_90] : memref<4x8xf32, #tpu.memory_space<smem>>
    %162 = vector.broadcast %161 : f32 to vector<8x128xf32>
    %163 = arith.mulf %69, %162 : vector<8x128xf32>
    %164 = arith.addf %160, %163 : vector<8x128xf32>
    %c0_91 = arith.constant 0 : index
    %c4_92 = arith.constant 4 : index
    %165 = memref.load %arg5[%c0_91, %c4_92] : memref<1x8xf32, #tpu.memory_space<smem>>
    %166 = vector.broadcast %165 : f32 to vector<8x128xf32>
    %167 = arith.addf %164, %166 : vector<8x128xf32>
    %cst_93 = arith.constant 0.000000e+00 : f32
    %168 = vector.broadcast %cst_93 : f32 to vector<8x128xf32>
    %169 = arith.maximumf %167, %168 : vector<8x128xf32>
    %c0_94 = arith.constant 0 : index
    %c5 = arith.constant 5 : index
    %170 = memref.load %arg4[%c0_94, %c5] : memref<4x8xf32, #tpu.memory_space<smem>>
    %171 = vector.broadcast %170 : f32 to vector<8x128xf32>
    %172 = arith.mulf %21, %171 : vector<8x128xf32>
    %c1_95 = arith.constant 1 : index
    %c5_96 = arith.constant 5 : index
    %173 = memref.load %arg4[%c1_95, %c5_96] : memref<4x8xf32, #tpu.memory_space<smem>>
    %174 = vector.broadcast %173 : f32 to vector<8x128xf32>
    %175 = arith.mulf %37, %174 : vector<8x128xf32>
    %176 = arith.addf %172, %175 : vector<8x128xf32>
    %c2_97 = arith.constant 2 : index
    %c5_98 = arith.constant 5 : index
    %177 = memref.load %arg4[%c2_97, %c5_98] : memref<4x8xf32, #tpu.memory_space<smem>>
    %178 = vector.broadcast %177 : f32 to vector<8x128xf32>
    %179 = arith.mulf %53, %178 : vector<8x128xf32>
    %180 = arith.addf %176, %179 : vector<8x128xf32>
    %c3_99 = arith.constant 3 : index
    %c5_100 = arith.constant 5 : index
    %181 = memref.load %arg4[%c3_99, %c5_100] : memref<4x8xf32, #tpu.memory_space<smem>>
    %182 = vector.broadcast %181 : f32 to vector<8x128xf32>
    %183 = arith.mulf %69, %182 : vector<8x128xf32>
    %184 = arith.addf %180, %183 : vector<8x128xf32>
    %c0_101 = arith.constant 0 : index
    %c5_102 = arith.constant 5 : index
    %185 = memref.load %arg5[%c0_101, %c5_102] : memref<1x8xf32, #tpu.memory_space<smem>>
    %186 = vector.broadcast %185 : f32 to vector<8x128xf32>
    %187 = arith.addf %184, %186 : vector<8x128xf32>
    %cst_103 = arith.constant 0.000000e+00 : f32
    %188 = vector.broadcast %cst_103 : f32 to vector<8x128xf32>
    %189 = arith.maximumf %187, %188 : vector<8x128xf32>
    %c0_104 = arith.constant 0 : index
    %c6 = arith.constant 6 : index
    %190 = memref.load %arg4[%c0_104, %c6] : memref<4x8xf32, #tpu.memory_space<smem>>
    %191 = vector.broadcast %190 : f32 to vector<8x128xf32>
    %192 = arith.mulf %21, %191 : vector<8x128xf32>
    %c1_105 = arith.constant 1 : index
    %c6_106 = arith.constant 6 : index
    %193 = memref.load %arg4[%c1_105, %c6_106] : memref<4x8xf32, #tpu.memory_space<smem>>
    %194 = vector.broadcast %193 : f32 to vector<8x128xf32>
    %195 = arith.mulf %37, %194 : vector<8x128xf32>
    %196 = arith.addf %192, %195 : vector<8x128xf32>
    %c2_107 = arith.constant 2 : index
    %c6_108 = arith.constant 6 : index
    %197 = memref.load %arg4[%c2_107, %c6_108] : memref<4x8xf32, #tpu.memory_space<smem>>
    %198 = vector.broadcast %197 : f32 to vector<8x128xf32>
    %199 = arith.mulf %53, %198 : vector<8x128xf32>
    %200 = arith.addf %196, %199 : vector<8x128xf32>
    %c3_109 = arith.constant 3 : index
    %c6_110 = arith.constant 6 : index
    %201 = memref.load %arg4[%c3_109, %c6_110] : memref<4x8xf32, #tpu.memory_space<smem>>
    %202 = vector.broadcast %201 : f32 to vector<8x128xf32>
    %203 = arith.mulf %69, %202 : vector<8x128xf32>
    %204 = arith.addf %200, %203 : vector<8x128xf32>
    %c0_111 = arith.constant 0 : index
    %c6_112 = arith.constant 6 : index
    %205 = memref.load %arg5[%c0_111, %c6_112] : memref<1x8xf32, #tpu.memory_space<smem>>
    %206 = vector.broadcast %205 : f32 to vector<8x128xf32>
    %207 = arith.addf %204, %206 : vector<8x128xf32>
    %cst_113 = arith.constant 0.000000e+00 : f32
    %208 = vector.broadcast %cst_113 : f32 to vector<8x128xf32>
    %209 = arith.maximumf %207, %208 : vector<8x128xf32>
    %c0_114 = arith.constant 0 : index
    %c7 = arith.constant 7 : index
    %210 = memref.load %arg4[%c0_114, %c7] : memref<4x8xf32, #tpu.memory_space<smem>>
    %211 = vector.broadcast %210 : f32 to vector<8x128xf32>
    %212 = arith.mulf %21, %211 : vector<8x128xf32>
    %c1_115 = arith.constant 1 : index
    %c7_116 = arith.constant 7 : index
    %213 = memref.load %arg4[%c1_115, %c7_116] : memref<4x8xf32, #tpu.memory_space<smem>>
    %214 = vector.broadcast %213 : f32 to vector<8x128xf32>
    %215 = arith.mulf %37, %214 : vector<8x128xf32>
    %216 = arith.addf %212, %215 : vector<8x128xf32>
    %c2_117 = arith.constant 2 : index
    %c7_118 = arith.constant 7 : index
    %217 = memref.load %arg4[%c2_117, %c7_118] : memref<4x8xf32, #tpu.memory_space<smem>>
    %218 = vector.broadcast %217 : f32 to vector<8x128xf32>
    %219 = arith.mulf %53, %218 : vector<8x128xf32>
    %220 = arith.addf %216, %219 : vector<8x128xf32>
    %c3_119 = arith.constant 3 : index
    %c7_120 = arith.constant 7 : index
    %221 = memref.load %arg4[%c3_119, %c7_120] : memref<4x8xf32, #tpu.memory_space<smem>>
    %222 = vector.broadcast %221 : f32 to vector<8x128xf32>
    %223 = arith.mulf %69, %222 : vector<8x128xf32>
    %224 = arith.addf %220, %223 : vector<8x128xf32>
    %c0_121 = arith.constant 0 : index
    %c7_122 = arith.constant 7 : index
    %225 = memref.load %arg5[%c0_121, %c7_122] : memref<1x8xf32, #tpu.memory_space<smem>>
    %226 = vector.broadcast %225 : f32 to vector<8x128xf32>
    %227 = arith.addf %224, %226 : vector<8x128xf32>
    %cst_123 = arith.constant 0.000000e+00 : f32
    %228 = vector.broadcast %cst_123 : f32 to vector<8x128xf32>
    %229 = arith.maximumf %227, %228 : vector<8x128xf32>
    %c0_124 = arith.constant 0 : index
    %c0_125 = arith.constant 0 : index
    %230 = memref.load %arg6[%c0_124, %c0_125] : memref<8x2xf32, #tpu.memory_space<smem>>
    %231 = vector.broadcast %230 : f32 to vector<8x128xf32>
    %232 = arith.mulf %89, %231 : vector<8x128xf32>
    %c1_126 = arith.constant 1 : index
    %c0_127 = arith.constant 0 : index
    %233 = memref.load %arg6[%c1_126, %c0_127] : memref<8x2xf32, #tpu.memory_space<smem>>
    %234 = vector.broadcast %233 : f32 to vector<8x128xf32>
    %235 = arith.mulf %109, %234 : vector<8x128xf32>
    %236 = arith.addf %232, %235 : vector<8x128xf32>
    %c2_128 = arith.constant 2 : index
    %c0_129 = arith.constant 0 : index
    %237 = memref.load %arg6[%c2_128, %c0_129] : memref<8x2xf32, #tpu.memory_space<smem>>
    %238 = vector.broadcast %237 : f32 to vector<8x128xf32>
    %239 = arith.mulf %129, %238 : vector<8x128xf32>
    %240 = arith.addf %236, %239 : vector<8x128xf32>
    %c3_130 = arith.constant 3 : index
    %c0_131 = arith.constant 0 : index
    %241 = memref.load %arg6[%c3_130, %c0_131] : memref<8x2xf32, #tpu.memory_space<smem>>
    %242 = vector.broadcast %241 : f32 to vector<8x128xf32>
    %243 = arith.mulf %149, %242 : vector<8x128xf32>
    %244 = arith.addf %240, %243 : vector<8x128xf32>
    %c4_132 = arith.constant 4 : index
    %c0_133 = arith.constant 0 : index
    %245 = memref.load %arg6[%c4_132, %c0_133] : memref<8x2xf32, #tpu.memory_space<smem>>
    %246 = vector.broadcast %245 : f32 to vector<8x128xf32>
    %247 = arith.mulf %169, %246 : vector<8x128xf32>
    %248 = arith.addf %244, %247 : vector<8x128xf32>
    %c5_134 = arith.constant 5 : index
    %c0_135 = arith.constant 0 : index
    %249 = memref.load %arg6[%c5_134, %c0_135] : memref<8x2xf32, #tpu.memory_space<smem>>
    %250 = vector.broadcast %249 : f32 to vector<8x128xf32>
    %251 = arith.mulf %189, %250 : vector<8x128xf32>
    %252 = arith.addf %248, %251 : vector<8x128xf32>
    %c6_136 = arith.constant 6 : index
    %c0_137 = arith.constant 0 : index
    %253 = memref.load %arg6[%c6_136, %c0_137] : memref<8x2xf32, #tpu.memory_space<smem>>
    %254 = vector.broadcast %253 : f32 to vector<8x128xf32>
    %255 = arith.mulf %209, %254 : vector<8x128xf32>
    %256 = arith.addf %252, %255 : vector<8x128xf32>
    %c7_138 = arith.constant 7 : index
    %c0_139 = arith.constant 0 : index
    %257 = memref.load %arg6[%c7_138, %c0_139] : memref<8x2xf32, #tpu.memory_space<smem>>
    %258 = vector.broadcast %257 : f32 to vector<8x128xf32>
    %259 = arith.mulf %229, %258 : vector<8x128xf32>
    %260 = arith.addf %256, %259 : vector<8x128xf32>
    %c0_140 = arith.constant 0 : index
    %c0_141 = arith.constant 0 : index
    %261 = memref.load %arg7[%c0_140, %c0_141] : memref<1x2xf32, #tpu.memory_space<smem>>
    %262 = vector.broadcast %261 : f32 to vector<8x128xf32>
    %263 = arith.addf %260, %262 : vector<8x128xf32>
    %c0_142 = arith.constant 0 : index
    %c1_143 = arith.constant 1 : index
    %264 = memref.load %arg6[%c0_142, %c1_143] : memref<8x2xf32, #tpu.memory_space<smem>>
    %265 = vector.broadcast %264 : f32 to vector<8x128xf32>
    %266 = arith.mulf %89, %265 : vector<8x128xf32>
    %c1_144 = arith.constant 1 : index
    %c1_145 = arith.constant 1 : index
    %267 = memref.load %arg6[%c1_144, %c1_145] : memref<8x2xf32, #tpu.memory_space<smem>>
    %268 = vector.broadcast %267 : f32 to vector<8x128xf32>
    %269 = arith.mulf %109, %268 : vector<8x128xf32>
    %270 = arith.addf %266, %269 : vector<8x128xf32>
    %c2_146 = arith.constant 2 : index
    %c1_147 = arith.constant 1 : index
    %271 = memref.load %arg6[%c2_146, %c1_147] : memref<8x2xf32, #tpu.memory_space<smem>>
    %272 = vector.broadcast %271 : f32 to vector<8x128xf32>
    %273 = arith.mulf %129, %272 : vector<8x128xf32>
    %274 = arith.addf %270, %273 : vector<8x128xf32>
    %c3_148 = arith.constant 3 : index
    %c1_149 = arith.constant 1 : index
    %275 = memref.load %arg6[%c3_148, %c1_149] : memref<8x2xf32, #tpu.memory_space<smem>>
    %276 = vector.broadcast %275 : f32 to vector<8x128xf32>
    %277 = arith.mulf %149, %276 : vector<8x128xf32>
    %278 = arith.addf %274, %277 : vector<8x128xf32>
    %c4_150 = arith.constant 4 : index
    %c1_151 = arith.constant 1 : index
    %279 = memref.load %arg6[%c4_150, %c1_151] : memref<8x2xf32, #tpu.memory_space<smem>>
    %280 = vector.broadcast %279 : f32 to vector<8x128xf32>
    %281 = arith.mulf %169, %280 : vector<8x128xf32>
    %282 = arith.addf %278, %281 : vector<8x128xf32>
    %c5_152 = arith.constant 5 : index
    %c1_153 = arith.constant 1 : index
    %283 = memref.load %arg6[%c5_152, %c1_153] : memref<8x2xf32, #tpu.memory_space<smem>>
    %284 = vector.broadcast %283 : f32 to vector<8x128xf32>
    %285 = arith.mulf %189, %284 : vector<8x128xf32>
    %286 = arith.addf %282, %285 : vector<8x128xf32>
    %c6_154 = arith.constant 6 : index
    %c1_155 = arith.constant 1 : index
    %287 = memref.load %arg6[%c6_154, %c1_155] : memref<8x2xf32, #tpu.memory_space<smem>>
    %288 = vector.broadcast %287 : f32 to vector<8x128xf32>
    %289 = arith.mulf %209, %288 : vector<8x128xf32>
    %290 = arith.addf %286, %289 : vector<8x128xf32>
    %c7_156 = arith.constant 7 : index
    %c1_157 = arith.constant 1 : index
    %291 = memref.load %arg6[%c7_156, %c1_157] : memref<8x2xf32, #tpu.memory_space<smem>>
    %292 = vector.broadcast %291 : f32 to vector<8x128xf32>
    %293 = arith.mulf %229, %292 : vector<8x128xf32>
    %294 = arith.addf %290, %293 : vector<8x128xf32>
    %c0_158 = arith.constant 0 : index
    %c1_159 = arith.constant 1 : index
    %295 = memref.load %arg7[%c0_158, %c1_159] : memref<1x2xf32, #tpu.memory_space<smem>>
    %296 = vector.broadcast %295 : f32 to vector<8x128xf32>
    %297 = arith.addf %294, %296 : vector<8x128xf32>
    %298 = arith.subf %263, %297 : vector<8x128xf32>
    %cst_160 = arith.constant 5.000000e-01 : f32
    %299 = vector.broadcast %cst_160 : f32 to vector<8x128xf32>
    %300 = arith.mulf %299, %298 : vector<8x128xf32>
    %301 = math.tanh %300 : vector<8x128xf32>
    %cst_161 = arith.constant 5.000000e-01 : f32
    %302 = vector.broadcast %cst_161 : f32 to vector<8x128xf32>
    %303 = arith.mulf %302, %301 : vector<8x128xf32>
    %cst_162 = arith.constant 5.000000e-01 : f32
    %304 = vector.broadcast %cst_162 : f32 to vector<8x128xf32>
    %305 = arith.addf %303, %304 : vector<8x128xf32>
    %cst_163 = arith.constant 1.000000e+00 : f32
    %306 = vector.broadcast %cst_163 : f32 to vector<8x128xf32>
    %307 = arith.subf %306, %305 : vector<8x128xf32>
    %c0_164 = arith.constant 0 : index
    %c0_165 = arith.constant 0 : index
    %c0_166 = arith.constant 0 : index
    %308 = vector.load %arg8[%c0_164, %c0_165, %c0_166] : memref<2x8x128xf32, #tpu.memory_space<vmem>>, vector<1x8x128xf32>
    %309 = vector.shape_cast %308 : vector<1x8x128xf32> to vector<8x128xf32>
    %310 = vector.shape_cast %305 : vector<8x128xf32> to vector<1x8x128xf32>
    tpu.vector_store %arg8[%c0_164, %c0_165, %c0_166], %310 {strides = array<i32>} : memref<2x8x128xf32, #tpu.memory_space<vmem>>, vector<1x8x128xf32>,
    %c1_167 = arith.constant 1 : index
    %c0_168 = arith.constant 0 : index
    %c0_169 = arith.constant 0 : index
    %311 = vector.load %arg8[%c1_167, %c0_168, %c0_169] : memref<2x8x128xf32, #tpu.memory_space<vmem>>, vector<1x8x128xf32>
    %312 = vector.shape_cast %311 : vector<1x8x128xf32> to vector<8x128xf32>
    %313 = vector.shape_cast %307 : vector<8x128xf32> to vector<1x8x128xf32>
    tpu.vector_store %arg8[%c1_167, %c0_168, %c0_169], %313 {strides = array<i32>} : memref<2x8x128xf32, #tpu.memory_space<vmem>>, vector<1x8x128xf32>,
    return
  }
  func.func @transform_0(%arg0: i32) -> (i32, i32, i32) {
    %c0_i32 = arith.constant 0 : i32
    %c0_i32_0 = arith.constant 0 : i32
    %c0_i32_1 = arith.constant 0 : i32
    return %c0_i32, %c0_i32_0, %arg0 : i32, i32, i32
  }
  func.func @transform_1(%arg0: i32) -> (i32, i32) {
    %c0_i32 = arith.constant 0 : i32
    %c0_i32_0 = arith.constant 0 : i32
    %c0_i32_1 = arith.constant 0 : i32
    return %c0_i32, %c0_i32_0 : i32, i32
  }
  func.func @transform_2(%arg0: i32) -> (i32, i32) {
    %c0_i32 = arith.constant 0 : i32
    %c0_i32_0 = arith.constant 0 : i32
    %c0_i32_1 = arith.constant 0 : i32
    return %c0_i32, %c0_i32_0 : i32, i32
  }
  func.func @transform_3(%arg0: i32) -> (i32, i32) {
    %c0_i32 = arith.constant 0 : i32
    %c0_i32_0 = arith.constant 0 : i32
    %c0_i32_1 = arith.constant 0 : i32
    return %c0_i32, %c0_i32_0 : i32, i32
  }
  func.func @transform_4(%arg0: i32) -> (i32, i32) {
    %c0_i32 = arith.constant 0 : i32
    %c0_i32_0 = arith.constant 0 : i32
    %c0_i32_1 = arith.constant 0 : i32
    return %c0_i32, %c0_i32_0 : i32, i32
  }
  func.func @transform_5(%arg0: i32) -> (i32, i32) {
    %c0_i32 = arith.constant 0 : i32
    %c0_i32_0 = arith.constant 0 : i32
    %c0_i32_1 = arith.constant 0 : i32
    return %c0_i32, %c0_i32_0 : i32, i32
  }
  func.func @transform_6(%arg0: i32) -> (i32, i32) {
    %c0_i32 = arith.constant 0 : i32
    %c0_i32_0 = arith.constant 0 : i32
    %c0_i32_1 = arith.constant 0 : i32
    return %c0_i32, %c0_i32_0 : i32, i32
  }
  func.func @transform_7(%arg0: i32) -> (i32, i32, i32) {
    %c0_i32 = arith.constant 0 : i32
    %c0_i32_0 = arith.constant 0 : i32
    %c0_i32_1 = arith.constant 0 : i32
    return %c0_i32, %c0_i32_0, %arg0 : i32, i32, i32
  }
}

</mosaic_0001>

<bundles_post_ra>
// kernel: tpu_custom_call.1
= control target key start
LH: loop header
LB: loop body
LE: loop exit
PB: predicated region body
PF: predicated region fallthrough
CT: control target
= control target key end

     0   :  { %12 = vsyncpa [#allocation3], 0  ;;  %s932_s0 = inlined_call_operand.hbm [shape: f32[3,8,128], index: 0, kind: input, shape index: {}]   ;;  %s933_s1 = inlined_call_operand.vmem [shape: f32[3,4], index: 1, kind: input, shape index: {}]   ;;  %s934_s2 = inlined_call_operand.vmem [shape: f32[1,4], index: 2, kind: input, shape index: {}]   ;;  %s935_s3 = inlined_call_operand.vmem [shape: f32[4,8], index: 3, kind: input, shape index: {}]   ;;  %s936_s4 = inlined_call_operand.vmem [shape: f32[1,8], index: 4, kind: input, shape index: {}]   ;;  %s937_s5 = inlined_call_operand.vmem [shape: f32[8,2], index: 5, kind: input, shape index: {}]   ;;  %s938_s6 = inlined_call_operand.vmem [shape: f32[1,2], index: 6, kind: input, shape index: {}]   ;;  %s939_s7 = inlined_call_operand.hbm [shape: f32[2,8,128], index: 7, kind: output, shape index: {}]  }
   0x1   :  { %13 = vsyncpa [#allocation5], 0 }
   0x2   :  { %14 = vsyncpa [#allocation8], 0 }
   0x3   :  { %15 = vsyncpa [#allocation11], 0 }
   0x4   :  { %16 = vsyncpa [#allocation14], 0  ;;  %s45_s26 = sshll.u32 %s934_s2, 4  ;;  %s46_s26 = int_to_ptr.vmem [resolvable:$true] %s45_s26 }
   0x5   :  { %17 = vsyncpa [#allocation4], 0  ;;  %s63_s29 = sshll.u32 %s936_s4, 4  ;;  %s643_s30 = smov [#allocation7]   ;;  %s64_s29 = int_to_ptr.vmem [resolvable:$true] %s63_s29 }
   0x6   :  { %48 = dma.vmem_to_smem %s46_s26, 16, %s643_s30, [#allocation8]  }
   0x7   :  { %s644_s8 = smov [#allocation10]   ;;  %s22_s11 = sshll.u32 %s932_s0, 4  ;;  %s23_s11 = int_to_ptr.hbm [resolvable:$true] %s22_s11 }
   0x8   :  { %66 = dma.vmem_to_smem %s64_s29, 16, %s644_s8, [#allocation11]  }
   0x9   :  { %s645_s12 = smov [#allocation2]   ;;  %s36_s15 = sshll.u32 %s933_s1, 4  ;;  %s37_s15 = int_to_ptr.vmem [resolvable:$true] %s36_s15 }
   0xa   :  { %s24_s13 = sshll.u32 %s645_s12, 4  ;;  %s646_s16 = smov 128   ;;  %s25_s13 = int_to_ptr.vmem [resolvable:$true] %s24_s13 }
   0xb   :  { %s647_s17 = smov 8   ;;  %s648_s4 = smov [#allocation6]  }
   0xc   :  { %30 = dma.hbm_to_vmem [thread:$0]  %s23_s11, 384, %s25_s13, [#allocation3], %s646_s16, %s646_s16, %s647_s17  }
   0xd   :  { %39 = dma.vmem_to_smem %s37_s15, 64, %s648_s4, [#allocation5]  }
   0xe   :  { %s54_s0 = sshll.u32 %s935_s3, 4  ;;  %s72_s22 = sshll.u32 %s937_s5, 4  ;;  %s55_s0 = int_to_ptr.vmem [resolvable:$true] %s54_s0  ;;  %s73_s22 = int_to_ptr.vmem [resolvable:$true] %s72_s22 }
   0xf   :  { %s649_s23 = smov [#allocation9]   ;;  %s650_s1 = smov [#allocation12]  }
  0x10   :  { %57 = dma.vmem_to_smem %s55_s0, 64, %s649_s23, [#allocation8]  }
  0x11   :  { %75 = dma.vmem_to_smem %s73_s22, 128, %s650_s1, [#allocation11]  }
  0x12   :  { %s81_s26 = sshll.u32 %s938_s6, 4  ;;  %s651_s27 = smov [#allocation13]   ;;  %s82_s26 = int_to_ptr.vmem [resolvable:$true] %s81_s26 }
  0x13   :  { %84 = dma.vmem_to_smem %s82_s26, 16, %s651_s27, [#allocation14]  }
  0x14   :  { %631 = dma.done.wait [#allocation3], 384  }
  0x15   :  { %632 = vsyncadd [#allocation3], 4294966912 }
  0x16   :  { %633 = dma.done.wait [#allocation5], 64  }
  0x17   :  { %634 = vsyncadd [#allocation5], 4294967232 }
  0x18   :  { %635 = dma.done.wait [#allocation8], 80  }
  0x19   :  { %636 = vsyncadd [#allocation8], 4294967216 }
  0x1a   :  { %637 = dma.done.wait [#allocation11], 144  }
  0x1b   :  { %638 = vsyncadd [#allocation11], 4294967152 }
  0x1c   :  { %639 = dma.done.wait [#allocation14], 16  }
  0x1d   :  { %640 = vsyncadd [#allocation14], 4294967280 }
  0x1e   :  { %113 = sfence }
  0x1f   :  { %s119_s3 = sld [smem:[#allocation6]]  ;;  %v114_v0 = vld [vmem:[#allocation2] sm:$0xff]  ;;  %v116_v1 = vld [vmem:[#allocation2 + $0x8] sm:$0xff]  ;;  %v118_v10 = vld [vmem:[#allocation2 + $0x10] sm:$0xff] }
  0x20   :  { %s431_s5 = sld [smem:[#allocation6 + $0x80]] }
  0x21   :  { %s432_s28 = sld [smem:[#allocation6 + $0x100]] }
  0x22   :  { %s717_s29 = sld [smem:[#allocation7]] }
  0x23   :  { %s433_s6 = sld [smem:[#allocation6 + $0x1]] }
  0x24   :  { %s434_s30 = sld [smem:[#allocation6 + $0x81]] }
  0x25   :  { %s435_s8 = sld [smem:[#allocation6 + $0x101]]  ;;  %v120_v2 = vstv %s119_s3 }
  0x26   :  { %s719_s9 = sld [smem:[#allocation7 + $0x1]]  ;;  %v123_v3 = vstv %s431_s5  ;;  %v121_v6 = vmul.f32 %v120_v2, %v114_v0 }
  0x27   :  { %s437_s10 = sld [smem:[#allocation6 + $0x2]]  ;;  %v124_v7 = vmul.f32 %v123_v3, %v116_v1  ;;  %v127_v11 = vstv %s432_s28 }
  0x28   :  { %s438_s11 = sld [smem:[#allocation6 + $0x82]]  ;;  %v128_v16 = vmul.f32 %v127_v11, %v118_v10  ;;  %v131_v25 = vstv %s717_s29 }
  0x29   :  { %v135_v4 = vstv %s433_s6  ;;  %s721_s12 = sld [smem:[#allocation6 + $0x102]]  ;;  %v125_v15 = vadd.f32 %v124_v7, %v121_v6 }
  0x2a   :  { %v138_v5 = vstv %s434_s30  ;;  %s723_s13 = sld [smem:[#allocation7 + $0x2]]  ;;  %v136_v8 = vmul.f32 %v135_v4, %v114_v0 }
  0x2b   :  { %v139_v9 = vmul.f32 %v138_v5, %v116_v1  ;;  %s441_s2 = sld [smem:[#allocation6 + $0x3]]  ;;  %v142_v12 = vstv %s435_s8  ;;  %v129_v24 = vadd.f32 %v128_v16, %v125_v15 }
  0x2c   :  { %s442_s14 = sld [smem:[#allocation6 + $0x83]]  ;;  %v143_v18 = vmul.f32 %v142_v12, %v118_v10  ;;  %v146_v31 = vstv %s719_s9 }
  0x2d   :  { %v150_v13 = vstv %s437_s10  ;;  %s725_s15 = sld [smem:[#allocation6 + $0x103]]  ;;  %v140_v17 = vadd.f32 %v139_v9, %v136_v8  ;;  %v132_v33 = vadd.f32 %v131_v25, %v129_v24 }
  0x2e   :  { %v153_v14 = vstv %s438_s11  ;;  %s727_s4 = sld [smem:[#allocation7 + $0x3]]  ;;  %v151_v19 = vmul.f32 %v150_v13, %v114_v0 }
  0x2f   :  { %s729_s18 = sld [smem:[#allocation9]]  ;;  %v154_v20 = vmul.f32 %v153_v14, %v116_v1  ;;  %v157_v21 = vstv %s721_s12  ;;  %v144_v26 = vadd.f32 %v143_v18, %v140_v17  ;;  %v760_v39 = vmax.f32 %v132_v33, 0.0 }
  0x30   :  { %s731_s19 = sld [smem:[#allocation9 + $0x80]]  ;;  %v158_v28 = vmul.f32 %v157_v21, %v118_v10  ;;  %v161_v38 = vstv %s723_s13 }
  0x31   :  { %v165_v22 = vstv %s441_s2  ;;  %s734_s0 = sld [smem:[#allocation9 + $0x100]]  ;;  %v155_v27 = vadd.f32 %v154_v20, %v151_v19  ;;  %v147_v34 = vadd.f32 %v146_v31, %v144_v26 }
  0x32   :  { %v168_v23 = vstv %s442_s14  ;;  %s736_s20 = sld [smem:[#allocation9 + $0x180]]  ;;  %v166_v29 = vmul.f32 %v165_v22, %v114_v0 }
  0x33   :  { %s739_s21 = sld [smem:[#allocation10]]  ;;  %v169_v30 = vmul.f32 %v168_v23, %v116_v1  ;;  %v172_v32 = vstv %s725_s15  ;;  %v159_v35 = vadd.f32 %v158_v28, %v155_v27  ;;  %v762_v40 = vmax.f32 %v147_v34, 0.0 }
  0x34   :  { %s741_s22 = sld [smem:[#allocation9 + $0x1]]  ;;  %v173_v37 = vmul.f32 %v172_v32, %v118_v10  ;;  %v176_v43 = vstv %s727_s4 }
  0x35   :  { %s745_s23 = sld [smem:[#allocation9 + $0x81]]  ;;  %v170_v36 = vadd.f32 %v169_v30, %v166_v29  ;;  %v162_v41 = vadd.f32 %v161_v38, %v159_v35  ;;  %v180_v44 = vstv %s729_s18 }
  0x36   :  { %s747_s1 = sld [smem:[#allocation9 + $0x101]]  ;;  %v183_v45 = vstv %s731_s19  ;;  %v181_v50 = vmul.f32 %v180_v44, %v760_v39 }
  0x37   :  { %s749_s24 = sld [smem:[#allocation9 + $0x181]]  ;;  %v174_v42 = vadd.f32 %v173_v37, %v170_v36  ;;  %v777_v48 = vmax.f32 %v162_v41, 0.0  ;;  %v184_v51 = vmul.f32 %v183_v45, %v762_v40  ;;  %v187_v52 = vstv %s734_s0 }
  0x38   :  { %s751_s25 = sld [smem:[#allocation10 + $0x1]]  ;;  %v191_v59 = vstv %s736_s20 }
  0x39   :  { %s754_s26 = sld [smem:[#allocation9 + $0x2]]  ;;  %v177_v49 = vadd.f32 %v176_v43, %v174_v42  ;;  %v185_v57 = vadd.f32 %v184_v51, %v181_v50  ;;  %v188_v58 = vmul.f32 %v187_v52, %v777_v48  ;;  %v195_v22 = vstv %s739_s21 }
  0x3a   :  { %s756_s27 = sld [smem:[#allocation9 + $0x82]]  ;;  %v199_v46 = vstv %s741_s22 }
  0x3b   :  { %s758_s3 = sld [smem:[#allocation9 + $0x102]]  ;;  %v202_v47 = vstv %s745_s23  ;;  %v200_v53 = vmul.f32 %v199_v46, %v760_v39  ;;  %v793_v56 = vmax.f32 %v177_v49, 0.0  ;;  %v189_v3 = vadd.f32 %v188_v58, %v185_v57 }
  0x3c   :  { %s764_s5 = sld [smem:[#allocation9 + $0x182]]  ;;  %v203_v54 = vmul.f32 %v202_v47, %v762_v40  ;;  %v206_v55 = vstv %s747_s1 }
  0x3d   :  { %s769_s28 = sld [smem:[#allocation10 + $0x2]]  ;;  %v207_v63 = vmul.f32 %v206_v55, %v777_v48  ;;  %v210_v2 = vstv %s749_s24  ;;  %v192_v4 = vmul.f32 %v191_v59, %v793_v56 }
  0x3e   :  { %s771_s29 = sld [smem:[#allocation9 + $0x3]]  ;;  %v204_v62 = vadd.f32 %v203_v54, %v200_v53  ;;  %v211_v12 = vmul.f32 %v210_v2, %v793_v56  ;;  %v214_v37 = vstv %s751_s25 }
  0x3f   :  { %s775_s6 = sld [smem:[#allocation9 + $0x83]]  ;;  %v218_v60 = vstv %s754_s26  ;;  %v193_v21 = vadd.f32 %v192_v4, %v189_v3 }
  0x40   :  { %s781_s30 = sld [smem:[#allocation9 + $0x103]]  ;;  %v221_v61 = vstv %s756_s27  ;;  %v219_v5 = vmul.f32 %v218_v60, %v760_v39  ;;  %v208_v11 = vadd.f32 %v207_v63, %v204_v62 }
  0x41   :  { %s784_s8 = sld [smem:[#allocation9 + $0x183]]  ;;  %v222_v6 = vmul.f32 %v221_v61, %v762_v40  ;;  %v225_v7 = vstv %s758_s3  ;;  %v856_v42 = vadd.f32 %v195_v22, %v193_v21 }
  0x42   :  { %s788_s9 = sld [smem:[#allocation10 + $0x3]]  ;;  %v229_v15 = vstv %s764_s5  ;;  %v226_v19 = vmul.f32 %v225_v7, %v777_v48  ;;  %v212_v25 = vadd.f32 %v211_v12, %v208_v11 }
  0x43   :  { %s791_s10 = sld [smem:[#allocation9 + $0x4]]  ;;  %v223_v18 = vadd.f32 %v222_v6, %v219_v5  ;;  %v230_v26 = vmul.f32 %v229_v15, %v793_v56  ;;  %v233_v43 = vstv %s769_s28 }
  0x44   :  { %s464_s11 = sld [smem:[#allocation9 + $0x84]]  ;;  %v237_v0 = vstv %s771_s29  ;;  %v867_v51 = vadd.f32 %v214_v37, %v212_v25 }
  0x45   :  { %s799_s12 = sld [smem:[#allocation9 + $0x104]]  ;;  %v240_v1 = vstv %s775_s6  ;;  %v238_v8 = vmul.f32 %v237_v0, %v760_v39  ;;  %v227_v33 = vadd.f32 %v226_v19, %v223_v18  ;;  %v197_v0 = vmax.f32 %v856_v42, 0.0 }
  0x46   :  { %s804_s13 = sld [smem:[#allocation9 + $0x184]]  ;;  %v241_v9 = vmul.f32 %v240_v1, %v762_v40  ;;  %v244_v13 = vstv %s781_s30  ;;  %v216_v11 = vmax.f32 %v867_v51, 0.0 }
  0x47   :  { %s807_s2 = sld [smem:[#allocation10 + $0x4]]  ;;  %v245_v24 = vmul.f32 %v244_v13, %v777_v48  ;;  %v248_v27 = vstv %s784_s8  ;;  %v231_v52 = vadd.f32 %v230_v26, %v227_v33 }
  0x48   :  { %s812_s14 = sld [smem:[#allocation9 + $0x5]]  ;;  %v242_v23 = vadd.f32 %v241_v9, %v238_v8  ;;  %v249_v41 = vmul.f32 %v248_v27, %v793_v56  ;;  %v252_v57 = vstv %s788_s9 }
  0x49   :  { %v256_v10 = vstv %s791_s10  ;;  %s818_s15 = sld [smem:[#allocation9 + $0x85]]  ;;  %v886_v3 = vadd.f32 %v233_v43, %v231_v52 }
  0x4a   :  { %v259_v14 = vstv %s464_s11  ;;  %s822_s4 = sld [smem:[#allocation9 + $0x105]]  ;;  %v257_v16 = vmul.f32 %v256_v10, %v760_v39  ;;  %v246_v38 = vadd.f32 %v245_v24, %v242_v23 }
  0x4b   :  { %v260_v17 = vmul.f32 %v259_v14, %v762_v40  ;;  %s827_s18 = sld [smem:[#allocation9 + $0x185]]  ;;  %v263_v20 = vstv %s799_s12 }
  0x4c   :  { %s831_s19 = sld [smem:[#allocation10 + $0x5]]  ;;  %v264_v30 = vmul.f32 %v263_v20, %v777_v48  ;;  %v267_v34 = vstv %s804_s13  ;;  %v250_v55 = vadd.f32 %v249_v41, %v246_v38 }
  0x4d   :  { %s835_s0 = sld [smem:[#allocation9 + $0x6]]  ;;  %v261_v29 = vadd.f32 %v260_v17, %v257_v16  ;;  %v268_v47 = vmul.f32 %v267_v34, %v793_v56  ;;  %v271_v4 = vstv %s807_s2 }
  0x4e   :  { %v275_v28 = vstv %s812_s14  ;;  %s840_s20 = sld [smem:[#allocation9 + $0x86]]  ;;  %v891_v7 = vadd.f32 %v252_v57, %v250_v55 }
  0x4f   :  { %v276_v31 = vmul.f32 %v275_v28, %v760_v39  ;;  %v278_v32 = vstv %s818_s15  ;;  %s845_s21 = sld [smem:[#allocation9 + $0x106]]  ;;  %v265_v46 = vadd.f32 %v264_v30, %v261_v29 }
  0x50   :  { %v279_v35 = vmul.f32 %v278_v32, %v762_v40  ;;  %v282_v36 = vstv %s822_s4  ;;  %s850_s22 = sld [smem:[#allocation9 + $0x186]]  ;;  %v254_v21 = vmax.f32 %v891_v7, 0.0 }
  0x51   :  { %s854_s23 = sld [smem:[#allocation10 + $0x6]]  ;;  %v283_v45 = vmul.f32 %v282_v36, %v777_v48  ;;  %v286_v49 = vstv %s827_s18  ;;  %v269_v1 = vadd.f32 %v268_v47, %v265_v46 }
  0x52   :  { %v280_v44 = vadd.f32 %v279_v35, %v276_v31  ;;  %s860_s1 = sld [smem:[#allocation9 + $0x7]]  ;;  %v287_v61 = vmul.f32 %v286_v49, %v793_v56  ;;  %v290_v16 = vstv %s831_s19 }
  0x53   :  { %v294_v50 = vstv %s835_s0  ;;  %s865_s24 = sld [smem:[#allocation9 + $0x87]]  ;;  %v898_v15 = vadd.f32 %v271_v4, %v269_v1  ;;  %s652_s0 = smov [#allocation15]  }
  0x54   :  { %v295_v53 = vmul.f32 %v294_v50, %v760_v39  ;;  %v297_v54 = vstv %s840_s20  ;;  %s871_s25 = sld [smem:[#allocation9 + $0x107]]  ;;  %v284_v60 = vadd.f32 %v283_v45, %v280_v44  ;;  %s412_s20 = sshll.u32 %s652_s0, 4  ;;  %s413_s20 = int_to_ptr.vmem [resolvable:$true] %s412_s20 }
  0x55   :  { %v298_v58 = vmul.f32 %v297_v54, %v762_v40  ;;  %v301_v59 = vstv %s845_s21  ;;  %s876_s26 = sld [smem:[#allocation9 + $0x187]]  ;;  %v273_v27 = vmax.f32 %v898_v15, 0.0 }
  0x56   :  { %v302_v62 = vmul.f32 %v301_v59, %v777_v48  ;;  %v305_v63 = vstv %s850_s22  ;;  %s881_s27 = sld [smem:[#allocation10 + $0x7]]  ;;  %v288_v12 = vadd.f32 %v287_v61, %v284_v60 }
  0x57   :  { %v299_v2 = vadd.f32 %v298_v58, %v295_v53  ;;  %s884_s3 = sld [smem:[#allocation12]]  ;;  %v306_v5 = vmul.f32 %v305_v63, %v793_v56  ;;  %v309_v22 = vstv %s854_s23  ;;  %s414_s23 = sshll.u32 %s939_s7, 4  ;;  %s415_s23 = int_to_ptr.hbm [resolvable:$true] %s414_s23 }
  0x58   :  { %v313_v6 = vstv %s860_s1  ;;  %s483_s5 = sld [smem:[#allocation12 + $0x80]]  ;;  %v291_v24 = vadd.f32 %v290_v16, %v288_v12 }
  0x59   :  { %v303_v8 = vadd.f32 %v302_v62, %v299_v2  ;;  %v314_v9 = vmul.f32 %v313_v6, %v760_v39  ;;  %v316_v10 = vstv %s865_s24  ;;  %s484_s28 = sld [smem:[#allocation12 + $0x100]]  ;;  %v235_v39 = vmax.f32 %v886_v3, 0.0 }
  0x5a   :  { %v317_v13 = vmul.f32 %v316_v10, %v762_v40  ;;  %v320_v14 = vstv %s871_s25  ;;  %s485_s29 = sld [smem:[#allocation12 + $0x180]]  ;;  %v292_v36 = vmax.f32 %v291_v24, 0.0 }
  0x5b   :  { %v321_v17 = vmul.f32 %v320_v14, %v777_v48  ;;  %v324_v18 = vstv %s876_s26  ;;  %s903_s6 = sld [smem:[#allocation12 + $0x200]]  ;;  %v307_v19 = vadd.f32 %v306_v5, %v303_v8 }
  0x5c   :  { %v318_v20 = vadd.f32 %v317_v13, %v314_v9  ;;  %s906_s30 = sld [smem:[#allocation12 + $0x280]]  ;;  %v325_v40 = vmul.f32 %v324_v18, %v793_v56  ;;  %v328_v37 = vstv %s881_s27 }
  0x5d   :  { %v332_v23 = vstv %s884_s3  ;;  %s914_s8 = sld [smem:[#allocation12 + $0x300]]  ;;  %v310_v30 = vadd.f32 %v309_v22, %v307_v19 }
  0x5e   :  { %v322_v25 = vadd.f32 %v321_v17, %v318_v20  ;;  %v333_v48 = vmul.f32 %v332_v23, %v197_v0  ;;  %v335_v26 = vstv %s483_s5  ;;  %s917_s9 = sld [smem:[#allocation12 + $0x380]] }
  0x5f   :  { %v336_v28 = vmul.f32 %v335_v26, %v216_v11  ;;  %v339_v29 = vstv %s484_s28  ;;  %s490_s10 = sld [smem:[#allocation12 + $0x1]]  ;;  %v311_v44 = vmax.f32 %v310_v30, 0.0 }
  0x60   :  { %v340_v56 = vmul.f32 %v339_v29, %v235_v39  ;;  %v343_v31 = vstv %s485_s29  ;;  %v326_v32 = vadd.f32 %v325_v40, %v322_v25  ;;  %s491_s11 = sld [smem:[#allocation12 + $0x81]] }
  0x61   :  { %v337_v33 = vadd.f32 %v336_v28, %v333_v48  ;;  %v344_v34 = vmul.f32 %v343_v31, %v254_v21  ;;  %v347_v35 = vstv %s903_s6  ;;  %s492_s12 = sld [smem:[#allocation12 + $0x101]] }
  0x62   :  { %v348_v41 = vmul.f32 %v347_v35, %v273_v27  ;;  %v351_v43 = vstv %s906_s30  ;;  %s493_s13 = sld [smem:[#allocation12 + $0x181]]  ;;  %v329_v45 = vadd.f32 %v328_v37, %v326_v32 }
  0x63   :  { %v341_v38 = vadd.f32 %v340_v56, %v337_v33  ;;  %s494_s2 = sld [smem:[#allocation12 + $0x201]]  ;;  %v352_v47 = vmul.f32 %v351_v43, %v292_v36  ;;  %v355_v49 = vstv %s914_s8 }
  0x64   :  { %s495_s14 = sld [smem:[#allocation12 + $0x281]]  ;;  %v330_v57 = vmax.f32 %v329_v45, 0.0  ;;  %v356_v58 = vmul.f32 %v355_v49, %v311_v44  ;;  %v359_v2 = vstv %s917_s9 }
  0x65   :  { %v345_v46 = vadd.f32 %v344_v34, %v341_v38  ;;  %v366_v50 = vstv %s490_s10  ;;  %s496_s15 = sld [smem:[#allocation12 + $0x301]] }
  0x66   :  { %v367_v52 = vmul.f32 %v366_v50, %v197_v0  ;;  %v369_v53 = vstv %s491_s11  ;;  %s497_s4 = sld [smem:[#allocation12 + $0x381]]  ;;  %v360_v0 = vmul.f32 %v359_v2, %v330_v57 }
  0x67   :  { %v349_v51 = vadd.f32 %v348_v41, %v345_v46  ;;  %v370_v54 = vmul.f32 %v369_v53, %v216_v11  ;;  %v373_v55 = vstv %s492_s12  ;;  %s362_s18 = sld [smem:[#allocation13]] }
  0x68   :  { %v374_v59 = vmul.f32 %v373_v55, %v235_v39  ;;  %v377_v60 = vstv %s493_s13  ;;  %s498_s19 = sld [smem:[#allocation13 + $0x1]] }
  0x69   :  { %v353_v61 = vadd.f32 %v352_v47, %v349_v51  ;;  %v371_v62 = vadd.f32 %v370_v54, %v367_v52  ;;  %v378_v63 = vmul.f32 %v377_v60, %v254_v21  ;;  %v381_v1 = vstv %s494_s2 }
  0x6a   :  { %v385_v3 = vstv %s495_s14  ;;  %v382_v5 = vmul.f32 %v381_v1, %v273_v27 }
  0x6b   :  { %v375_v4 = vadd.f32 %v374_v59, %v371_v62  ;;  %v389_v6 = vstv %s496_s15  ;;  %v357_v42 = vadd.f32 %v356_v58, %v353_v61  ;;  %v386_v8 = vmul.f32 %v385_v3, %v292_v36 }
  0x6c   :  { %v393_v9 = vstv %s497_s4  ;;  %v390_v11 = vmul.f32 %v389_v6, %v311_v44 }
  0x6d   :  { %v379_v7 = vadd.f32 %v378_v63, %v375_v4  ;;  %v361_v12 = vadd.f32 %v360_v0, %v357_v42  ;;  %v394_v14 = vmul.f32 %v393_v9, %v330_v57  ;;  %v363_v15 = vstv %s362_s18 }
  0x6e   :  { %v397_v17 = vstv %s498_s19 }
  0x6f   :  { %v383_v10 = vadd.f32 %v382_v5, %v379_v7  ;;  %v364_v18 = vadd.f32 %v363_v15, %v361_v12 }
  0x71   :  { %v387_v13 = vadd.f32 %v386_v8, %v383_v10 }
  0x73   :  { %v391_v16 = vadd.f32 %v390_v11, %v387_v13 }
  0x75   :  { %v395_v39 = vadd.f32 %v394_v14, %v391_v16 }
  0x77   :  { %v398_v19 = vadd.f32 %v397_v17, %v395_v39 }
  0x79   :  { %v399_v20 = vsub.f32 %v364_v18, %v398_v19 }
  0x7b   :  { %v400_v21 = vmul.f32 0.5, %v399_v20 }
  0x7d   :  { %509 = vtanh.f32 %v400_v21 }
  0x83   :  { %v510_v22 = vpop.eup %509 }
  0x84   :  { %v402_v40 = vmul.f32 0.5, %v510_v22 }
  0x86   :  { %v403_v23 = vadd.f32 0.5, %v402_v40 }
  0x88   :  { %v404_v24 = vsub.f32 1.0, %v403_v23  ;;  %405 = vst [vmem:[#allocation15] sm:$0xff] %v403_v23 }
  0x8a   :  { %407 = vst [vmem:[#allocation15 + $0x8] sm:$0xff] %v404_v24 }
  0x8b   :  { %420 = dma.vmem_to_hbm [thread:$0]  %s413_s20, 256, %s415_s23, [#allocation4], %s646_s16, %s646_s16, %s647_s17  }
  0x8c   :  { %641 = dma.done.wait [#allocation4], 256  }
  0x8d   :  { %642 = vsyncadd [#allocation4], 4294967040 }
  0x8e   :  { %425 = vsyncpa [#allocation3], 1 }
  0x8f   :  { %426 = vsyncpa [#allocation4], 1 }
  0x90   :  { %427 = vsyncpa [#allocation5], 1 }
  0x91   :  { %428 = vsyncpa [#allocation8], 1 }
  0x92   :  { %429 = vsyncpa [#allocation11], 1 }
  0x93   :  { %430 = vsyncpa [#allocation14], 1 }

</bundles_post_ra>
